<compile_context>
chip_gen: v7x
topology: tpu7x:2x2x1
jax: 0.10.0
libtpu: 0.0.40
codegen_flags: <defaults>
</compile_context>

<pallas_src>
import jax
import jax.numpy as jnp
from jax import lax
from jax.experimental import pallas as pl
from jax.experimental.pallas import tpu as pltpu


_VMEM_SPEC = pl.BlockSpec(memory_space=pltpu.MemorySpace.VMEM)


# ----------------------------- Pallas kernel -------------------------------

def _make_fused_kernel(B, C, H, W, C_mid, E, S, D):
    """Builds the fused dual-encoder kernel for static geometry."""
    Hp, Wp = H + 2, W + 2          # zero-padded spatial extent (pad=1)
    K = 9 * C                      # im2col contraction length (3x3xC)
    HWp = H * Wp                   # extended (row-strided) output positions
    # packed weight-slab row offsets (matrix blocks kept 8-row aligned)
    r_wconv = 0
    r_wproj = r_wconv + C_mid
    r_wtxt = r_wproj + C_mid
    r_bproj = r_wtxt + D
    r_btxt = r_bproj + 1

    def kernel(img_ref, txt_ref, w_ref, out_ref):
        # ---- static views into the packed weight slab (zero-cost) ----
        wconv_t = w_ref[r_wconv:r_wconv + C_mid, 0:K]        # (C_mid, K)
        bconv = w_ref[r_wconv:r_wconv + C_mid, K:K + 1]      # (C_mid, 1)
        wproj = w_ref[r_wproj:r_wproj + C_mid, 0:E]          # (C_mid, E)
        w_txt = w_ref[r_wtxt:r_wtxt + D, 0:E]                # (D, E)
        bproj = w_ref[r_bproj:r_bproj + 1, 0:E]              # (1, E)
        b_txt = w_ref[r_btxt:r_btxt + 1, 0:E]                # (1, E)
        # pooling row: 1/(H*W) at valid positions, 0 at the 2 junk columns per
        # row and the zero-padded tail (divisor folded in).
        pool_row = img_ref[B * C:B * C + 1, 0:HWp]           # (1, HWp)

        # -------- image branch: in-kernel im2col = 9 shifted-slice dots ------
        pooled_cols = []
        for b in range(B):
            x_b = img_ref[b * C:(b + 1) * C, :]              # (C, lanes)
            h_b = None
            for di in range(3):
                for dj in range(3):
                    t = di * 3 + dj
                    off = di * Wp + dj                       # flat tap offset
                    x_tap = x_b[:, off:off + HWp]            # (C, HWp)
                    w_t = wconv_t[:, t * C:(t + 1) * C]      # (C_mid, C)
                    d = jnp.dot(w_t, x_tap,
                                preferred_element_type=jnp.float32)
                    h_b = d if h_b is None else h_b + d      # (C_mid, HWp)
            # bias + ReLU on lane-dense rows (junk columns masked by pool_row)
            h_b = jnp.maximum(h_b + bconv, 0.0)
            # masked global average pool: VPU multiply + lane reduction
            pooled_cols.append(
                jnp.sum(h_b * pool_row, axis=1, keepdims=True))   # (C_mid, 1)
        pooled = jnp.concatenate(pooled_cols, axis=1)        # (C_mid, B)
        # projection head without an explicit transpose: contract dim 0 of both
        img = lax.dot_general(pooled, wproj, (((0,), (0,)), ((), ())),
                              preferred_element_type=jnp.float32) + bproj

        # -------- text branch: mean over sequence + linear --------
        rows = [jnp.mean(txt_ref[b * S:(b + 1) * S, :], axis=0, keepdims=True)
                for b in range(B)]
        pooled_txt = jnp.concatenate(rows, axis=0)           # (B, D)
        txt = jnp.dot(pooled_txt, w_txt,
                      preferred_element_type=jnp.float32) + b_txt

        # single combined store (one writeback DMA)
        out_ref[...] = jnp.concatenate([img, txt], axis=1).astype(out_ref.dtype)

    return kernel


# ------------------------------ JAX wrapper ---------------------------------

@jax.jit
def lost_found_forward(images, texts, params):
    """Mirrors LostFoundSystem.forward: returns (image_emb, text_emb).

    params["temperature"] exists for parity with nn.Parameter but is unused in
    forward, exactly like the PyTorch module.
    """
    B, C, H, W = images.shape
    S, D = texts.shape[1], texts.shape[2]
    C_mid, E = params["wproj"].shape
    Hp, Wp = H + 2, W + 2
    K = 9 * C
    lanes = ((Hp * Wp + 127) // 128) * 128
    assert lanes >= (2 * Wp + 2) + H * Wp      # last tap slice stays in range

    # --- image slab: zero-padded NCHW image, flattened, + pool-mask row ---
    xp = jnp.pad(images.astype(jnp.float32), ((0, 0), (0, 0), (1, 1), (1, 1)))
    xp_lin = jnp.pad(xp.reshape(B * C, Hp * Wp),
                     ((0, 0), (0, lanes - Hp * Wp)))          # (B*C, lanes)
    q = jnp.arange(lanes)
    valid = (q < H * Wp) & ((q % Wp) < W)                     # constant-folded
    pool_row = jnp.where(valid, 1.0 / (H * W), 0.0).astype(jnp.float32)[None, :]
    img_slab = jnp.concatenate([xp_lin, pool_row], axis=0)    # (B*C+1, lanes)

    # --- packed weight slab (one DMA instead of six) ---
    r_wproj = C_mid
    r_wtxt = 2 * C_mid
    r_bproj = r_wtxt + D
    r_btxt = r_bproj + 1
    n_rows = r_btxt + 1
    wslab = jnp.zeros((n_rows, max(K + 1, E)), jnp.float32)
    wslab = wslab.at[0:C_mid, 0:K].set(params["wconv"].T)
    wslab = wslab.at[0:C_mid, K:K + 1].set(params["bconv"].reshape(C_mid, 1))
    wslab = wslab.at[r_wproj:r_wproj + C_mid, 0:E].set(params["wproj"])
    wslab = wslab.at[r_wtxt:r_wtxt + D, 0:E].set(params["w_txt"])
    wslab = wslab.at[r_bproj, 0:E].set(params["bproj"].reshape(E))
    wslab = wslab.at[r_btxt, 0:E].set(params["b_txt"].reshape(E))

    texts2d = texts.reshape(B * S, D).astype(jnp.float32)     # (B*S, D)

    kernel = _make_fused_kernel(B, C, H, W, C_mid, E, S, D)
    out = pl.pallas_call(
        kernel,
        out_shape=jax.ShapeDtypeStruct((B, 2 * E), jnp.float32),
        in_specs=[_VMEM_SPEC, _VMEM_SPEC, _VMEM_SPEC],
        out_specs=_VMEM_SPEC,
    )(img_slab, texts2d, wslab)
    return out[:, :E], out[:, E:]


# ------------------------- pure-JAX reference check -------------------------

def _im2col_nchw(images, k=3, pad=1):
    B, C, H, W = images.shape
    x = jnp.transpose(images, (0, 2, 3, 1))                   # NHWC
    xp = jnp.pad(x, ((0, 0), (pad, pad), (pad, pad), (0, 0)))
    slabs = []
    for di in range(k):
        for dj in range(k):
            slabs.append(xp[:, di:di + H, dj:dj + W, :])      # (B,H,W,C)
    patches = jnp.concatenate(slabs, axis=-1)                 # (B,H,W,k*k*C)
    return patches.reshape(B, H * W, k * k * C)


def _reference(images, texts, p):
    patches = _im2col_nchw(images)
    h = jnp.maximum(jnp.einsum("bpk,kc->bpc", patches, p["wconv"]) + p["bconv"], 0.0)
    img = jnp.mean(h, axis=1) @ p["wproj"] + p["bproj"]
    txt = jnp.mean(texts, axis=1) @ p["w_txt"] + p["b_txt"]
    return img, txt


if __name__ == "__main__":
    key = jax.random.PRNGKey(0)
    k_img, k_txt, k1, k2, k3, k4, k5, k6 = jax.random.split(key, 8)

    B, C, H, W = 2, 4, 16, 16      # images NCHW
    S, D_txt = 8, 16               # text tokens already embedded (B, S, D_txt)
    C_mid, E = 8, 32               # conv channels, embedding dim
    K = C * 3 * 3

    images = jax.random.normal(k_img, (B, C, H, W), dtype=jnp.float32)
    texts = jax.random.normal(k_txt, (B, S, D_txt), dtype=jnp.float32)

    params = {
        "wconv": 0.1 * jax.random.normal(k1, (K, C_mid), dtype=jnp.float32),
        "bconv": 0.1 * jax.random.normal(k2, (1, C_mid), dtype=jnp.float32),
        "wproj": 0.1 * jax.random.normal(k3, (C_mid, E), dtype=jnp.float32),
        "bproj": 0.1 * jax.random.normal(k4, (1, E), dtype=jnp.float32),
        "w_txt": 0.1 * jax.random.normal(k5, (D_txt, E), dtype=jnp.float32),
        "b_txt": 0.1 * jax.random.normal(k6, (1, E), dtype=jnp.float32),
        # parity with nn.Parameter(torch.ones([]) * 0.07); unused in forward
        "temperature": jnp.float32(0.07),
    }

    img_emb, txt_emb = jax.block_until_ready(
        lost_found_forward(images, texts, params))

    ref_img, ref_txt = _reference(images, texts, params)
    assert img_emb.shape == (B, E) and txt_emb.shape == (B, E)
    assert jnp.allclose(img_emb, ref_img, rtol=1e-4, atol=1e-4)
    assert jnp.allclose(txt_emb, ref_txt, rtol=1e-4, atol=1e-4)

    print("KERNEL_OK")
</pallas_src>

<mosaic_0001>
module attributes {stable_mosaic.version = 11 : i64} {
  func.func @kernel(%arg0: memref<9x384xf32, #tpu.memory_space<vmem>>, %arg1: memref<16x16xf32, #tpu.memory_space<vmem>>, %arg2: memref<34x37xf32, #tpu.memory_space<vmem>>, %arg3: memref<2x64xf32, #tpu.memory_space<vmem>>) attributes {dimension_semantics = [], scalar_prefetch = 0 : i64, scratch_operands = 0 : i64, tpu.core_type = #tpu.core_type<tc>} {
    %c0 = arith.constant 0 : index
    %c0_0 = arith.constant 0 : index
    %0 = vector.load %arg2[%c0, %c0_0] : memref<34x37xf32, #tpu.memory_space<vmem>>, vector<8x36xf32>
    %c0_1 = arith.constant 0 : index
    %c36 = arith.constant 36 : index
    %1 = vector.load %arg2[%c0_1, %c36] : memref<34x37xf32, #tpu.memory_space<vmem>>, vector<8x1xf32>
    %c8 = arith.constant 8 : index
    %c0_2 = arith.constant 0 : index
    %2 = vector.load %arg2[%c8, %c0_2] : memref<34x37xf32, #tpu.memory_space<vmem>>, vector<8x32xf32>
    %c16 = arith.constant 16 : index
    %c0_3 = arith.constant 0 : index
    %3 = vector.load %arg2[%c16, %c0_3] : memref<34x37xf32, #tpu.memory_space<vmem>>, vector<16x32xf32>
    %c32 = arith.constant 32 : index
    %c0_4 = arith.constant 0 : index
    %4 = vector.load %arg2[%c32, %c0_4] : memref<34x37xf32, #tpu.memory_space<vmem>>, vector<1x32xf32>
    %c33 = arith.constant 33 : index
    %c0_5 = arith.constant 0 : index
    %5 = vector.load %arg2[%c33, %c0_5] : memref<34x37xf32, #tpu.memory_space<vmem>>, vector<1x32xf32>
    %c8_6 = arith.constant 8 : index
    %c0_7 = arith.constant 0 : index
    %6 = vector.load %arg0[%c8_6, %c0_7] : memref<9x384xf32, #tpu.memory_space<vmem>>, vector<1x288xf32>
    %c0_8 = arith.constant 0 : index
    %c0_9 = arith.constant 0 : index
    %7 = vector.load %arg0[%c0_8, %c0_9] : memref<9x384xf32, #tpu.memory_space<vmem>>, vector<4x384xf32>
    %8 = vector.extract_strided_slice %7 {offsets = [0, 0], sizes = [4, 288], strides = [1, 1]} : vector<4x384xf32> to vector<4x288xf32>
    %9 = vector.extract_strided_slice %0 {offsets = [0, 0], sizes = [8, 4], strides = [1, 1]} : vector<8x36xf32> to vector<8x4xf32>
    %cst = arith.constant dense<0.000000e+00> : vector<8x288xf32>
    %10 = tpu.matmul %9, %8, %cst {dimension_numbers = #tpu.dot_dimension_numbers<[1], [0], [0], [1], [0, 0, 1, 1], [], []>} : vector<8x4xf32>, vector<4x288xf32>, vector<8x288xf32> -> vector<8x288xf32>
    %11 = vector.extract_strided_slice %7 {offsets = [0, 1], sizes = [4, 288], strides = [1, 1]} : vector<4x384xf32> to vector<4x288xf32>
    %12 = vector.extract_strided_slice %0 {offsets = [0, 4], sizes = [8, 4], strides = [1, 1]} : vector<8x36xf32> to vector<8x4xf32>
    %cst_10 = arith.constant dense<0.000000e+00> : vector<8x288xf32>
    %13 = tpu.matmul %12, %11, %cst_10 {dimension_numbers = #tpu.dot_dimension_numbers<[1], [0], [0], [1], [0, 0, 1, 1], [], []>} : vector<8x4xf32>, vector<4x288xf32>, vector<8x288xf32> -> vector<8x288xf32>
    %14 = arith.addf %10, %13 : vector<8x288xf32>
    %15 = vector.extract_strided_slice %7 {offsets = [0, 2], sizes = [4, 288], strides = [1, 1]} : vector<4x384xf32> to vector<4x288xf32>
    %16 = vector.extract_strided_slice %0 {offsets = [0, 8], sizes = [8, 4], strides = [1, 1]} : vector<8x36xf32> to vector<8x4xf32>
    %cst_11 = arith.constant dense<0.000000e+00> : vector<8x288xf32>
    %17 = tpu.matmul %16, %15, %cst_11 {dimension_numbers = #tpu.dot_dimension_numbers<[1], [0], [0], [1], [0, 0, 1, 1], [], []>} : vector<8x4xf32>, vector<4x288xf32>, vector<8x288xf32> -> vector<8x288xf32>
    %18 = arith.addf %14, %17 : vector<8x288xf32>
    %19 = vector.extract_strided_slice %7 {offsets = [0, 18], sizes = [4, 288], strides = [1, 1]} : vector<4x384xf32> to vector<4x288xf32>
    %20 = vector.extract_strided_slice %0 {offsets = [0, 12], sizes = [8, 4], strides = [1, 1]} : vector<8x36xf32> to vector<8x4xf32>
    %cst_12 = arith.constant dense<0.000000e+00> : vector<8x288xf32>
    %21 = tpu.matmul %20, %19, %cst_12 {dimension_numbers = #tpu.dot_dimension_numbers<[1], [0], [0], [1], [0, 0, 1, 1], [], []>} : vector<8x4xf32>, vector<4x288xf32>, vector<8x288xf32> -> vector<8x288xf32>
    %22 = arith.addf %18, %21 : vector<8x288xf32>
    %23 = vector.extract_strided_slice %7 {offsets = [0, 19], sizes = [4, 288], strides = [1, 1]} : vector<4x384xf32> to vector<4x288xf32>
    %24 = vector.extract_strided_slice %0 {offsets = [0, 16], sizes = [8, 4], strides = [1, 1]} : vector<8x36xf32> to vector<8x4xf32>
    %cst_13 = arith.constant dense<0.000000e+00> : vector<8x288xf32>
    %25 = tpu.matmul %24, %23, %cst_13 {dimension_numbers = #tpu.dot_dimension_numbers<[1], [0], [0], [1], [0, 0, 1, 1], [], []>} : vector<8x4xf32>, vector<4x288xf32>, vector<8x288xf32> -> vector<8x288xf32>
    %26 = arith.addf %22, %25 : vector<8x288xf32>
    %27 = vector.extract_strided_slice %7 {offsets = [0, 20], sizes = [4, 288], strides = [1, 1]} : vector<4x384xf32> to vector<4x288xf32>
    %28 = vector.extract_strided_slice %0 {offsets = [0, 20], sizes = [8, 4], strides = [1, 1]} : vector<8x36xf32> to vector<8x4xf32>
    %cst_14 = arith.constant dense<0.000000e+00> : vector<8x288xf32>
    %29 = tpu.matmul %28, %27, %cst_14 {dimension_numbers = #tpu.dot_dimension_numbers<[1], [0], [0], [1], [0, 0, 1, 1], [], []>} : vector<8x4xf32>, vector<4x288xf32>, vector<8x288xf32> -> vector<8x288xf32>
    %30 = arith.addf %26, %29 : vector<8x288xf32>
    %31 = vector.extract_strided_slice %7 {offsets = [0, 36], sizes = [4, 288], strides = [1, 1]} : vector<4x384xf32> to vector<4x288xf32>
    %32 = vector.extract_strided_slice %0 {offsets = [0, 24], sizes = [8, 4], strides = [1, 1]} : vector<8x36xf32> to vector<8x4xf32>
    %cst_15 = arith.constant dense<0.000000e+00> : vector<8x288xf32>
    %33 = tpu.matmul %32, %31, %cst_15 {dimension_numbers = #tpu.dot_dimension_numbers<[1], [0], [0], [1], [0, 0, 1, 1], [], []>} : vector<8x4xf32>, vector<4x288xf32>, vector<8x288xf32> -> vector<8x288xf32>
    %34 = arith.addf %30, %33 : vector<8x288xf32>
    %35 = vector.extract_strided_slice %7 {offsets = [0, 37], sizes = [4, 288], strides = [1, 1]} : vector<4x384xf32> to vector<4x288xf32>
    %36 = vector.extract_strided_slice %0 {offsets = [0, 28], sizes = [8, 4], strides = [1, 1]} : vector<8x36xf32> to vector<8x4xf32>
    %cst_16 = arith.constant dense<0.000000e+00> : vector<8x288xf32>
    %37 = tpu.matmul %36, %35, %cst_16 {dimension_numbers = #tpu.dot_dimension_numbers<[1], [0], [0], [1], [0, 0, 1, 1], [], []>} : vector<8x4xf32>, vector<4x288xf32>, vector<8x288xf32> -> vector<8x288xf32>
    %38 = arith.addf %34, %37 : vector<8x288xf32>
    %39 = vector.extract_strided_slice %7 {offsets = [0, 38], sizes = [4, 288], strides = [1, 1]} : vector<4x384xf32> to vector<4x288xf32>
    %40 = vector.extract_strided_slice %0 {offsets = [0, 32], sizes = [8, 4], strides = [1, 1]} : vector<8x36xf32> to vector<8x4xf32>
    %cst_17 = arith.constant dense<0.000000e+00> : vector<8x288xf32>
    %41 = tpu.matmul %40, %39, %cst_17 {dimension_numbers = #tpu.dot_dimension_numbers<[1], [0], [0], [1], [0, 0, 1, 1], [], []>} : vector<8x4xf32>, vector<4x288xf32>, vector<8x288xf32> -> vector<8x288xf32>
    %42 = arith.addf %38, %41 : vector<8x288xf32>
    %43 = vector.broadcast %1 : vector<8x1xf32> to vector<8x288xf32>
    %44 = arith.addf %42, %43 : vector<8x288xf32>
    %cst_18 = arith.constant 0.000000e+00 : f32
    %45 = vector.broadcast %cst_18 : f32 to vector<8x288xf32>
    %46 = arith.maximumf %44, %45 : vector<8x288xf32>
    %47 = vector.broadcast %6 : vector<1x288xf32> to vector<8x288xf32>
    %48 = arith.mulf %46, %47 : vector<8x288xf32>
    %cst_19 = arith.constant dense<0.000000e+00> : vector<8xf32>
    %49 = vector.multi_reduction <add>, %48, %cst_19 [1] : vector<8x288xf32> to vector<8xf32>
    %50 = vector.shape_cast %49 : vector<8xf32> to vector<8x1xf32>
    %c4 = arith.constant 4 : index
    %c0_20 = arith.constant 0 : index
    %51 = vector.load %arg0[%c4, %c0_20] : memref<9x384xf32, #tpu.memory_space<vmem>>, vector<4x384xf32>
    %52 = vector.extract_strided_slice %51 {offsets = [0, 0], sizes = [4, 288], strides = [1, 1]} : vector<4x384xf32> to vector<4x288xf32>
    %53 = vector.extract_strided_slice %0 {offsets = [0, 0], sizes = [8, 4], strides = [1, 1]} : vector<8x36xf32> to vector<8x4xf32>
    %cst_21 = arith.constant dense<0.000000e+00> : vector<8x288xf32>
    %54 = tpu.matmul %53, %52, %cst_21 {dimension_numbers = #tpu.dot_dimension_numbers<[1], [0], [0], [1], [0, 0, 1, 1], [], []>} : vector<8x4xf32>, vector<4x288xf32>, vector<8x288xf32> -> vector<8x288xf32>
    %55 = vector.extract_strided_slice %51 {offsets = [0, 1], sizes = [4, 288], strides = [1, 1]} : vector<4x384xf32> to vector<4x288xf32>
    %56 = vector.extract_strided_slice %0 {offsets = [0, 4], sizes = [8, 4], strides = [1, 1]} : vector<8x36xf32> to vector<8x4xf32>
    %cst_22 = arith.constant dense<0.000000e+00> : vector<8x288xf32>
    %57 = tpu.matmul %56, %55, %cst_22 {dimension_numbers = #tpu.dot_dimension_numbers<[1], [0], [0], [1], [0, 0, 1, 1], [], []>} : vector<8x4xf32>, vector<4x288xf32>, vector<8x288xf32> -> vector<8x288xf32>
    %58 = arith.addf %54, %57 : vector<8x288xf32>
    %59 = vector.extract_strided_slice %51 {offsets = [0, 2], sizes = [4, 288], strides = [1, 1]} : vector<4x384xf32> to vector<4x288xf32>
    %60 = vector.extract_strided_slice %0 {offsets = [0, 8], sizes = [8, 4], strides = [1, 1]} : vector<8x36xf32> to vector<8x4xf32>
    %cst_23 = arith.constant dense<0.000000e+00> : vector<8x288xf32>
    %61 = tpu.matmul %60, %59, %cst_23 {dimension_numbers = #tpu.dot_dimension_numbers<[1], [0], [0], [1], [0, 0, 1, 1], [], []>} : vector<8x4xf32>, vector<4x288xf32>, vector<8x288xf32> -> vector<8x288xf32>
    %62 = arith.addf %58, %61 : vector<8x288xf32>
    %63 = vector.extract_strided_slice %51 {offsets = [0, 18], sizes = [4, 288], strides = [1, 1]} : vector<4x384xf32> to vector<4x288xf32>
    %64 = vector.extract_strided_slice %0 {offsets = [0, 12], sizes = [8, 4], strides = [1, 1]} : vector<8x36xf32> to vector<8x4xf32>
    %cst_24 = arith.constant dense<0.000000e+00> : vector<8x288xf32>
    %65 = tpu.matmul %64, %63, %cst_24 {dimension_numbers = #tpu.dot_dimension_numbers<[1], [0], [0], [1], [0, 0, 1, 1], [], []>} : vector<8x4xf32>, vector<4x288xf32>, vector<8x288xf32> -> vector<8x288xf32>
    %66 = arith.addf %62, %65 : vector<8x288xf32>
    %67 = vector.extract_strided_slice %51 {offsets = [0, 19], sizes = [4, 288], strides = [1, 1]} : vector<4x384xf32> to vector<4x288xf32>
    %68 = vector.extract_strided_slice %0 {offsets = [0, 16], sizes = [8, 4], strides = [1, 1]} : vector<8x36xf32> to vector<8x4xf32>
    %cst_25 = arith.constant dense<0.000000e+00> : vector<8x288xf32>
    %69 = tpu.matmul %68, %67, %cst_25 {dimension_numbers = #tpu.dot_dimension_numbers<[1], [0], [0], [1], [0, 0, 1, 1], [], []>} : vector<8x4xf32>, vector<4x288xf32>, vector<8x288xf32> -> vector<8x288xf32>
    %70 = arith.addf %66, %69 : vector<8x288xf32>
    %71 = vector.extract_strided_slice %51 {offsets = [0, 20], sizes = [4, 288], strides = [1, 1]} : vector<4x384xf32> to vector<4x288xf32>
    %72 = vector.extract_strided_slice %0 {offsets = [0, 20], sizes = [8, 4], strides = [1, 1]} : vector<8x36xf32> to vector<8x4xf32>
    %cst_26 = arith.constant dense<0.000000e+00> : vector<8x288xf32>
    %73 = tpu.matmul %72, %71, %cst_26 {dimension_numbers = #tpu.dot_dimension_numbers<[1], [0], [0], [1], [0, 0, 1, 1], [], []>} : vector<8x4xf32>, vector<4x288xf32>, vector<8x288xf32> -> vector<8x288xf32>
    %74 = arith.addf %70, %73 : vector<8x288xf32>
    %75 = vector.extract_strided_slice %51 {offsets = [0, 36], sizes = [4, 288], strides = [1, 1]} : vector<4x384xf32> to vector<4x288xf32>
    %76 = vector.extract_strided_slice %0 {offsets = [0, 24], sizes = [8, 4], strides = [1, 1]} : vector<8x36xf32> to vector<8x4xf32>
    %cst_27 = arith.constant dense<0.000000e+00> : vector<8x288xf32>
    %77 = tpu.matmul %76, %75, %cst_27 {dimension_numbers = #tpu.dot_dimension_numbers<[1], [0], [0], [1], [0, 0, 1, 1], [], []>} : vector<8x4xf32>, vector<4x288xf32>, vector<8x288xf32> -> vector<8x288xf32>
    %78 = arith.addf %74, %77 : vector<8x288xf32>
    %79 = vector.extract_strided_slice %51 {offsets = [0, 37], sizes = [4, 288], strides = [1, 1]} : vector<4x384xf32> to vector<4x288xf32>
    %80 = vector.extract_strided_slice %0 {offsets = [0, 28], sizes = [8, 4], strides = [1, 1]} : vector<8x36xf32> to vector<8x4xf32>
    %cst_28 = arith.constant dense<0.000000e+00> : vector<8x288xf32>
    %81 = tpu.matmul %80, %79, %cst_28 {dimension_numbers = #tpu.dot_dimension_numbers<[1], [0], [0], [1], [0, 0, 1, 1], [], []>} : vector<8x4xf32>, vector<4x288xf32>, vector<8x288xf32> -> vector<8x288xf32>
    %82 = arith.addf %78, %81 : vector<8x288xf32>
    %83 = vector.extract_strided_slice %51 {offsets = [0, 38], sizes = [4, 288], strides = [1, 1]} : vector<4x384xf32> to vector<4x288xf32>
    %84 = vector.extract_strided_slice %0 {offsets = [0, 32], sizes = [8, 4], strides = [1, 1]} : vector<8x36xf32> to vector<8x4xf32>
    %cst_29 = arith.constant dense<0.000000e+00> : vector<8x288xf32>
    %85 = tpu.matmul %84, %83, %cst_29 {dimension_numbers = #tpu.dot_dimension_numbers<[1], [0], [0], [1], [0, 0, 1, 1], [], []>} : vector<8x4xf32>, vector<4x288xf32>, vector<8x288xf32> -> vector<8x288xf32>
    %86 = arith.addf %82, %85 : vector<8x288xf32>
    %87 = vector.broadcast %1 : vector<8x1xf32> to vector<8x288xf32>
    %88 = arith.addf %86, %87 : vector<8x288xf32>
    %cst_30 = arith.constant 0.000000e+00 : f32
    %89 = vector.broadcast %cst_30 : f32 to vector<8x288xf32>
    %90 = arith.maximumf %88, %89 : vector<8x288xf32>
    %91 = vector.broadcast %6 : vector<1x288xf32> to vector<8x288xf32>
    %92 = arith.mulf %90, %91 : vector<8x288xf32>
    %cst_31 = arith.constant dense<0.000000e+00> : vector<8xf32>
    %93 = vector.multi_reduction <add>, %92, %cst_31 [1] : vector<8x288xf32> to vector<8xf32>
    %94 = vector.shape_cast %93 : vector<8xf32> to vector<8x1xf32>
    %95 = tpu.concatenate %50, %94 in 1 : vector<8x1xf32>, vector<8x1xf32> -> vector<8x2xf32>
    %cst_32 = arith.constant dense<0.000000e+00> : vector<2x32xf32>
    %96 = tpu.matmul %95, %2, %cst_32 {dimension_numbers = #tpu.dot_dimension_numbers<[0], [0], [1], [1], [0, 1, 1, 1], [], []>} : vector<8x2xf32>, vector<8x32xf32>, vector<2x32xf32> -> vector<2x32xf32>
    %97 = vector.broadcast %4 : vector<1x32xf32> to vector<2x32xf32>
    %98 = arith.addf %96, %97 : vector<2x32xf32>
    %c0_33 = arith.constant 0 : index
    %c0_34 = arith.constant 0 : index
    %99 = vector.load %arg1[%c0_33, %c0_34] : memref<16x16xf32, #tpu.memory_space<vmem>>, vector<8x16xf32>
    %cst_35 = arith.constant dense<0.000000e+00> : vector<16xf32>
    %100 = vector.multi_reduction <add>, %99, %cst_35 [0] : vector<8x16xf32> to vector<16xf32>
    %101 = vector.shape_cast %100 : vector<16xf32> to vector<1x16xf32>
    %cst_36 = arith.constant 8.000000e+00 : f32
    %102 = vector.broadcast %cst_36 : f32 to vector<1x16xf32>
    %103 = arith.divf %101, %102 : vector<1x16xf32>
    %c8_37 = arith.constant 8 : index
    %c0_38 = arith.constant 0 : index
    %104 = vector.load %arg1[%c8_37, %c0_38] : memref<16x16xf32, #tpu.memory_space<vmem>>, vector<8x16xf32>
    %cst_39 = arith.constant dense<0.000000e+00> : vector<16xf32>
    %105 = vector.multi_reduction <add>, %104, %cst_39 [0] : vector<8x16xf32> to vector<16xf32>
    %106 = vector.shape_cast %105 : vector<16xf32> to vector<1x16xf32>
    %cst_40 = arith.constant 8.000000e+00 : f32
    %107 = vector.broadcast %cst_40 : f32 to vector<1x16xf32>
    %108 = arith.divf %106, %107 : vector<1x16xf32>
    %109 = tpu.concatenate %103, %108 in 0 : vector<1x16xf32>, vector<1x16xf32> -> vector<2x16xf32>
    %cst_41 = arith.constant dense<0.000000e+00> : vector<2x32xf32>
    %110 = tpu.matmul %109, %3, %cst_41 {dimension_numbers = #tpu.dot_dimension_numbers<[1], [0], [0], [1], [0, 0, 1, 1], [], []>} : vector<2x16xf32>, vector<16x32xf32>, vector<2x32xf32> -> vector<2x32xf32>
    %111 = vector.broadcast %5 : vector<1x32xf32> to vector<2x32xf32>
    %112 = arith.addf %110, %111 : vector<2x32xf32>
    %113 = tpu.concatenate %98, %112 in 1 : vector<2x32xf32>, vector<2x32xf32> -> vector<2x64xf32>
    %c0_42 = arith.constant 0 : index
    %c0_43 = arith.constant 0 : index
    %114 = vector.load %arg3[%c0_42, %c0_43] : memref<2x64xf32, #tpu.memory_space<vmem>>, vector<2x64xf32>
    tpu.vector_store %arg3[%c0_42, %c0_43], %113 {strides = array<i32>} : memref<2x64xf32, #tpu.memory_space<vmem>>, vector<2x64xf32>,
    return
  }
}

</mosaic_0001>

<bundles_post_ra>
// kernel: lost_found_forward.1
= control target key start
LH: loop header
LB: loop body
LE: loop exit
PB: predicated region body
PF: predicated region fallthrough
CT: control target
= control target key end

     0   :  { %v3463_v2 = vmov 0.0   ;;  %vm3464_vm0 = vmmov 0   ;;  %s3465_s16 = smov 127   ;;  %s3466_s21 = smov 124   ;;  %vm43_vm1 = vcmask 1043456   ;;  %vm37_vm2 = vcmask 1039360   ;;  %s3934_s0 = inlined_call_operand.vmem [shape: f32[9,384], index: 0, kind: input, shape index: {}]   ;;  %s3935_s2 = inlined_call_operand.vmem [shape: f32[34,37], index: 2, kind: input, shape index: {}]   ;;  %s3936_s1 = inlined_call_operand.vmem [shape: f32[16,16], index: 1, kind: input, shape index: {}]   ;;  %s3937_s3 = inlined_call_operand.vmem [shape: f32[2,64], index: 3, kind: output, shape index: {}]  }
   0x1   :  { %v3506_v0 = vld [vmem:[%s3934_s0 + $0x8] sm:$0xf]  ;;  %v3511_v1 = vld [vmem:[%s3934_s0] sm:$0xf]  ;;  %3305 = vmatprep.subr.mxu1 %v3463_v2  ;;  %3307 = vmatprep.mubr.msk.f32.mxu1 %vm3464_vm0, %v3463_v2  ;;  %v3523_v3 = vld [vmem:[%s3934_s0 + $0x10] sm:$0xf] }
   0x2   :  { %33 = vrot.lane.b32.xlu0 %v3506_v0, %s3465_s16  ;;  %31 = vrot.lane.b32.xlu1 %v3511_v1, %s3465_s16  ;;  %v3528_v4 = vld [vmem:[%s3935_s2] sm:$0xff]  ;;  %s3467_s22 = smov 126   ;;  %s3468_s23 = smov 120   ;;  %v1517_v5 = vld [vmem:[%s3934_s0 + $0x8] sm:$0xf0]  ;;  %vm40_vm3 = vcmask 31744  }
   0x3   :  { %114 = vmatprep.mubr.f32.mxu0 %v3463_v2  ;;  %s3469_s24 = smov 110   ;;  %s3470_s25 = smov 116   ;;  %v1518_v6 = vld [vmem:[%s3934_s0 + $0x10] sm:$0xf0]  ;;  %v3590_v7 = vrot.slane %v1517_v5, 4  ;;  %vm348_vm4 = vcmask 1031168  }
   0x4   :  { %s3471_s26 = smov 109   ;;  %s3472_s27 = smov 112   ;;  %v3592_v8 = vrot.slane %v1518_v6, 4  ;;  %v1516_v9 = vld [vmem:[%s3934_s0] sm:$0xf0]  ;;  %vm511_vm5 = vcmask 900096  }
   0x5   :  { %s3473_s28 = smov 108   ;;  %s3474_s29 = smov 92   ;;  %v3601_v10 = vrot.slane %v1516_v9, 4  ;;  %v3480_v23 = vmov 36   ;;  %vm674_vm6 = vcmask 891904   ;;  %vm837_vm7 = vcmask 883712  }
   0x6   :  { %35 = vrot.lane.b32.xlu0 %v3523_v3, %s3465_s16  ;;  %26 = vrot.lane.b32.xlu1 %v3528_v4, %s3466_s21  ;;  %s3475_s30 = smov 104   ;;  %s3476_s4 = smov 91   ;;  %vm1000_vm8 = vcmask 752640   ;;  %vm1163_vm9 = vcmask 744448   ;;  %vm1326_vm10 = vcmask 736256   ;;  %vm1511_vm11 = vcmask 261120  }
   0x7   :  { %s3477_s5 = smov 100   ;;  %s3478_s6 = smov 90   ;;  %3462 = vset.pattern.permute.xlu0 %v3480_v23  ;;  %vm3060_vm12 = vcmask 130048   ;;  %vm3079_vm13 = vcmask 1040384   ;;  %vm2947_vm14 = vcmask 7168   ;;  %vm2985_vm15 = vcmask 64512  }
   0x8   :  { %s3479_s11 = smov 96  }
   0xa   :  { %344 = vrot.lane.b32.xlu0 %v3506_v0, %s3467_s22  ;;  %346 = vrot.lane.b32.xlu1 %v3523_v3, %s3467_s22 }
   0xe   :  { %342 = vrot.lane.b32.xlu0 %v3511_v1, %s3467_s22  ;;  %340 = vrot.lane.b32.xlu1 %v3528_v4, %s3468_s23 }
  0x12   :  { %507 = vrot.lane.b32.xlu0 %v3506_v0, %s3469_s24  ;;  %509 = vrot.lane.b32.xlu1 %v3523_v3, %s3469_s24 }
  0x16   :  { %505 = vrot.lane.b32.xlu0 %v3511_v1, %s3469_s24  ;;  %503 = vrot.lane.b32.xlu1 %v3528_v4, %s3470_s25 }
  0x1a   :  { %670 = vrot.lane.b32.xlu0 %v3506_v0, %s3471_s26  ;;  %672 = vrot.lane.b32.xlu1 %v3523_v3, %s3471_s26 }
  0x1e   :  { %668 = vrot.lane.b32.xlu0 %v3511_v1, %s3471_s26  ;;  %666 = vrot.lane.b32.xlu1 %v3528_v4, %s3472_s27 }
  0x22   :  { %833 = vrot.lane.b32.xlu0 %v3506_v0, %s3473_s28  ;;  %835 = vrot.lane.b32.xlu1 %v3523_v3, %s3473_s28 }
  0x26   :  { %831 = vrot.lane.b32.xlu0 %v3511_v1, %s3473_s28  ;;  %829 = vrot.lane.b32.xlu1 %v3528_v4, %s3473_s28 }
  0x2a   :  { %996 = vrot.lane.b32.xlu0 %v3506_v0, %s3474_s29  ;;  %998 = vrot.lane.b32.xlu1 %v3523_v3, %s3474_s29 }
  0x2e   :  { %994 = vrot.lane.b32.xlu0 %v3511_v1, %s3474_s29  ;;  %992 = vrot.lane.b32.xlu1 %v3528_v4, %s3475_s30 }
  0x32   :  { %1159 = vrot.lane.b32.xlu0 %v3506_v0, %s3476_s4  ;;  %1161 = vrot.lane.b32.xlu1 %v3523_v3, %s3476_s4 }
  0x36   :  { %1157 = vrot.lane.b32.xlu0 %v3511_v1, %s3476_s4  ;;  %1155 = vrot.lane.b32.xlu1 %v3528_v4, %s3477_s5 }
  0x3a   :  { %1322 = vrot.lane.b32.xlu0 %v3506_v0, %s3478_s6  ;;  %1324 = vrot.lane.b32.xlu1 %v3523_v3, %s3478_s6 }
  0x3e   :  { %1320 = vrot.lane.b32.xlu0 %v3511_v1, %s3478_s6  ;;  %1318 = vrot.lane.b32.xlu1 %v3528_v4, %s3479_s11 }
  0x42   :  { %1527 = vrot.lane.b32.xlu0 %v3590_v7, %s3465_s16  ;;  %1529 = vrot.lane.b32.xlu1 %v3592_v8, %s3465_s16 }
  0x46   :  { %1525 = vrot.lane.b32.xlu0 %v3601_v10, %s3465_s16  ;;  %1829 = vrot.lane.b32.xlu1 %v3590_v7, %s3467_s22 }
  0x4a   :  { %1831 = vrot.lane.b32.xlu0 %v3592_v8, %s3467_s22  ;;  %1827 = vrot.lane.b32.xlu1 %v3601_v10, %s3467_s22 }
  0x4e   :  { %1987 = vrot.lane.b32.xlu0 %v3590_v7, %s3469_s24  ;;  %1989 = vrot.lane.b32.xlu1 %v3592_v8, %s3469_s24 }
  0x52   :  { %1985 = vrot.lane.b32.xlu0 %v3601_v10, %s3469_s24  ;;  %2145 = vrot.lane.b32.xlu1 %v3590_v7, %s3471_s26 }
  0x56   :  { %2147 = vrot.lane.b32.xlu0 %v3592_v8, %s3471_s26  ;;  %2143 = vrot.lane.b32.xlu1 %v3601_v10, %s3471_s26  ;;  %s3482_s26 = smov 32  }
  0x5a   :  { %2303 = vrot.lane.b32.xlu0 %v3590_v7, %s3473_s28  ;;  %2305 = vrot.lane.b32.xlu1 %v3592_v8, %s3473_s28 }
  0x5e   :  { %2301 = vrot.lane.b32.xlu0 %v3601_v10, %s3473_s28  ;;  %2461 = vrot.lane.b32.xlu1 %v3590_v7, %s3474_s29 }
  0x62   :  { %2463 = vrot.lane.b32.xlu0 %v3592_v8, %s3474_s29  ;;  %2459 = vrot.lane.b32.xlu1 %v3601_v10, %s3474_s29 }
  0x66   :  { %2619 = vrot.lane.b32.xlu0 %v3590_v7, %s3476_s4  ;;  %2621 = vrot.lane.b32.xlu1 %v3592_v8, %s3476_s4 }
  0x6a   :  { %2617 = vrot.lane.b32.xlu0 %v3601_v10, %s3476_s4  ;;  %2777 = vrot.lane.b32.xlu1 %v3590_v7, %s3478_s6 }
  0x6e   :  { %2779 = vrot.lane.b32.xlu0 %v3592_v8, %s3478_s6  ;;  %2775 = vrot.lane.b32.xlu1 %v3601_v10, %s3478_s6 }
  0x72   :  { %1482 = vperm.xlu0 %3462, %v3528_v4  }
  0x74   :  { %v34_v11 = vpop.permute.xlu0 %33  ;;  %v32_v12 = vpop.permute.xlu1 %31 }
  0x75   :  { %v38_v16 = vsel %vm37_vm2, %v32_v12, %v34_v11 }
  0x78   :  { %v36_v13 = vpop.permute.xlu0 %35  ;;  %v3647_v14 = vpop.permute.xlu1 %26 }
  0x79   :  { %3306 = vmatpush3.msk.msra.mxu1 %vm43_vm1, %v36_v13  ;;  %v39_v15 = vsel %vm37_vm2, %v34_v11, %v36_v13 }
  0x7a   :  { %3170 = vmatprep.subr.msk.mxu0 %vm43_vm1, %v39_v15  ;;  %3308 = vmatmul.mubr.msk.f32.vlgmr.msra.gmra.mrb[0].mxu1 %vm40_vm3, %v3647_v14 }
  0x7b   :  { %3171 = vmatpush1.msk.msra.mxu0 %vm43_vm1, %v38_v16  ;;  %3310 = vmatprep.subr.mxu1 %v3463_v2 }
  0x7c   :  { %v345_v17 = vpop.permute.xlu0 %344  ;;  %3172 = vmatmul.mubr.msk.f32.vlgmr.msra.gmra.mrb[0].mxu0 %vm40_vm3, %v3647_v14  ;;  %3175 = vmatprep.subr.msk.mxu0 %vm43_vm1, %v3506_v0  ;;  %v347_v18 = vpop.permute.xlu1 %346 }
  0x7d   :  { %v350_v19 = vsel %vm348_vm4, %v345_v17, %v347_v18  ;;  %3176 = vmatpush1.msk.msra.mxu0 %vm43_vm1, %v3511_v1  ;;  %3311 = vmatpush3.msk.msra.mxu1 %vm43_vm1, %v3523_v3 }
  0x7e   :  { %3312 = vmatprep.mubr.msk.f32.mxu1 %vm3464_vm0, %v3463_v2  ;;  %3315 = vmatprep.subr.mxu1 %v3463_v2 }
  0x7f   :  { %3313 = vmatmul.mubr.msk.f32.vlgmr.msra.gmra.mrb[2].mxu1 %vm40_vm3, %v3528_v4  ;;  %3180 = vmatprep.subr.msk.mxu0 %vm43_vm1, %v350_v19 }
  0x80   :  { %v343_v20 = vpop.permute.xlu0 %342  ;;  %v3672_v21 = vpop.permute.xlu1 %340  ;;  %3316 = vmatpush3.msk.msra.mxu1 %vm43_vm1, %v347_v18  ;;  %3317 = vmatprep.mubr.msk.f32.mxu1 %vm3464_vm0, %v3463_v2 }
  0x81   :  { %263 = vmatprep.mubr.f32.mxu0 %v3463_v2  ;;  %3320 = vmatprep.subr.mxu1 %v3463_v2  ;;  %v349_v22 = vsel %vm348_vm4, %v343_v20, %v345_v17 }
  0x83   :  { %3318 = vmatmul.mubr.msk.f32.vlgmr.msra.gmra.mrb[4].mxu1 %vm40_vm3, %v3672_v21 }
  0x84   :  { %v508_v24 = vpop.permute.xlu0 %507  ;;  %3177 = vmatmul.mubr.msk.f32.vlgmr.msra.gmra.mrb[0].mxu0 %vm40_vm3, %v3528_v4  ;;  %v510_v25 = vpop.permute.xlu1 %509  ;;  %3322 = vmatprep.mubr.msk.f32.mxu1 %vm3464_vm0, %v3463_v2 }
  0x85   :  { %3181 = vmatpush1.msk.msra.mxu0 %vm43_vm1, %v349_v22  ;;  %v513_v26 = vsel %vm511_vm5, %v508_v24, %v510_v25  ;;  %3321 = vmatpush3.msk.msra.mxu1 %vm43_vm1, %v510_v25 }
  0x86   :  { %3185 = vmatprep.subr.msk.mxu0 %vm43_vm1, %v513_v26  ;;  %423 = vmatprep.mubr.f32.mxu0 %v3463_v2 }
  0x87   :  { %3325 = vmatprep.subr.mxu1 %v3463_v2 }
  0x88   :  { %v506_v27 = vpop.permute.xlu0 %505  ;;  %v3693_v28 = vpop.permute.xlu1 %503 }
  0x89   :  { %3323 = vmatmul.mubr.msk.f32.vlgmr.msra.gmra.mrb[6].mxu1 %vm40_vm3, %v3693_v28  ;;  %v512_v29 = vsel %vm511_vm5, %v506_v27, %v508_v24 }
  0x8a   :  { %3327 = vmatprep.mubr.msk.f32.mxu1 %vm3464_vm0, %v3463_v2 }
  0x8c   :  { %v671_v30 = vpop.permute.xlu0 %670  ;;  %3182 = vmatmul.mubr.msk.f32.vlgmr.msra.gmra.mrb[0].mxu0 %vm40_vm3, %v3672_v21  ;;  %v673_v31 = vpop.permute.xlu1 %672 }
  0x8d   :  { %3186 = vmatpush1.msk.msra.mxu0 %vm43_vm1, %v512_v29  ;;  %v676_v32 = vsel %vm674_vm6, %v671_v30, %v673_v31  ;;  %3326 = vmatpush3.msk.msra.mxu1 %vm43_vm1, %v673_v31 }
  0x8e   :  { %3190 = vmatprep.subr.msk.mxu0 %vm43_vm1, %v676_v32  ;;  %586 = vmatprep.mubr.f32.mxu0 %v3463_v2 }
  0x8f   :  { %3330 = vmatprep.subr.mxu1 %v3463_v2 }
  0x90   :  { %v669_v33 = vpop.permute.xlu0 %668  ;;  %v3708_v34 = vpop.permute.xlu1 %666 }
  0x91   :  { %3328 = vmatmul.mubr.msk.f32.vlgmr.msra.gmra.mrb[8].mxu1 %vm40_vm3, %v3708_v34  ;;  %v675_v35 = vsel %vm674_vm6, %v669_v33, %v671_v30 }
  0x92   :  { %3332 = vmatprep.mubr.msk.f32.mxu1 %vm3464_vm0, %v3463_v2 }
  0x94   :  { %v834_v36 = vpop.permute.xlu0 %833  ;;  %3187 = vmatmul.mubr.msk.f32.vlgmr.msra.gmra.mrb[0].mxu0 %vm40_vm3, %v3693_v28  ;;  %v836_v37 = vpop.permute.xlu1 %835 }
  0x95   :  { %3191 = vmatpush1.msk.msra.mxu0 %vm43_vm1, %v675_v35  ;;  %v839_v38 = vsel %vm837_vm7, %v834_v36, %v836_v37  ;;  %3331 = vmatpush3.msk.msra.mxu1 %vm43_vm1, %v836_v37 }
  0x96   :  { %3195 = vmatprep.subr.msk.mxu0 %vm43_vm1, %v839_v38  ;;  %749 = vmatprep.mubr.f32.mxu0 %v3463_v2 }
  0x97   :  { %3335 = vmatprep.subr.mxu1 %v3463_v2 }
  0x98   :  { %v832_v39 = vpop.permute.xlu0 %831  ;;  %v3723_v40 = vpop.permute.xlu1 %829 }
  0x99   :  { %3333 = vmatmul.mubr.msk.f32.vlgmr.msra.gmra.mrb[10].mxu1 %vm40_vm3, %v3723_v40  ;;  %v838_v41 = vsel %vm837_vm7, %v832_v39, %v834_v36 }
  0x9a   :  { %3337 = vmatprep.mubr.msk.f32.mxu1 %vm3464_vm0, %v3463_v2 }
  0x9c   :  { %v997_v42 = vpop.permute.xlu0 %996  ;;  %3192 = vmatmul.mubr.msk.f32.vlgmr.msra.gmra.mrb[0].mxu0 %vm40_vm3, %v3708_v34  ;;  %v999_v43 = vpop.permute.xlu1 %998 }
  0x9d   :  { %3196 = vmatpush1.msk.msra.mxu0 %vm43_vm1, %v838_v41  ;;  %v1002_v44 = vsel %vm1000_vm8, %v997_v42, %v999_v43  ;;  %3336 = vmatpush3.msk.msra.mxu1 %vm43_vm1, %v999_v43 }
  0x9e   :  { %3200 = vmatprep.subr.msk.mxu0 %vm43_vm1, %v1002_v44  ;;  %912 = vmatprep.mubr.f32.mxu0 %v3463_v2 }
  0x9f   :  { %3340 = vmatprep.subr.mxu1 %v3463_v2 }
  0xa0   :  { %v995_v45 = vpop.permute.xlu0 %994  ;;  %v3738_v46 = vpop.permute.xlu1 %992 }
  0xa1   :  { %3338 = vmatmul.mubr.msk.f32.vlgmr.msra.gmra.mrb[12].mxu1 %vm40_vm3, %v3738_v46  ;;  %v1001_v47 = vsel %vm1000_vm8, %v995_v45, %v997_v42 }
  0xa2   :  { %3342 = vmatprep.mubr.msk.f32.mxu1 %vm3464_vm0, %v3463_v2 }
  0xa4   :  { %v1160_v48 = vpop.permute.xlu0 %1159  ;;  %3197 = vmatmul.mubr.msk.f32.vlgmr.msra.gmra.mrb[0].mxu0 %vm40_vm3, %v3723_v40  ;;  %v1162_v49 = vpop.permute.xlu1 %1161 }
  0xa5   :  { %3201 = vmatpush1.msk.msra.mxu0 %vm43_vm1, %v1001_v47  ;;  %v1165_v50 = vsel %vm1163_vm9, %v1160_v48, %v1162_v49  ;;  %3341 = vmatpush3.msk.msra.mxu1 %vm43_vm1, %v1162_v49 }
  0xa6   :  { %3205 = vmatprep.subr.msk.mxu0 %vm43_vm1, %v1165_v50  ;;  %1075 = vmatprep.mubr.f32.mxu0 %v3463_v2 }
  0xa7   :  { %3345 = vmatprep.subr.mxu1 %v3463_v2 }
  0xa8   :  { %v1158_v51 = vpop.permute.xlu0 %1157  ;;  %v3753_v52 = vpop.permute.xlu1 %1155 }
  0xa9   :  { %3343 = vmatmul.mubr.msk.f32.vlgmr.msra.gmra.mrb[14].mxu1 %vm40_vm3, %v3753_v52  ;;  %v1164_v53 = vsel %vm1163_vm9, %v1158_v51, %v1160_v48 }
  0xaa   :  { %3347 = vmatprep.mubr.msk.f32.mxu1 %vm3464_vm0, %v3463_v2 }
  0xac   :  { %v1323_v54 = vpop.permute.xlu0 %1322  ;;  %3202 = vmatmul.mubr.msk.f32.vlgmr.msra.gmra.mrb[0].mxu0 %vm40_vm3, %v3738_v46  ;;  %v1325_v55 = vpop.permute.xlu1 %1324 }
  0xad   :  { %3206 = vmatpush1.msk.msra.mxu0 %vm43_vm1, %v1164_v53  ;;  %v1328_v56 = vsel %vm1326_vm10, %v1323_v54, %v1325_v55  ;;  %3346 = vmatpush3.msk.msra.mxu1 %vm43_vm1, %v1325_v55 }
  0xae   :  { %3210 = vmatprep.subr.msk.mxu0 %vm43_vm1, %v1328_v56  ;;  %1238 = vmatprep.mubr.f32.mxu0 %v3463_v2 }
  0xaf   :  { %3350 = vmatprep.subr.mxu1 %v3463_v2 }
  0xb0   :  { %v1321_v57 = vpop.permute.xlu0 %1320  ;;  %v3768_v58 = vpop.permute.xlu1 %1318 }
  0xb1   :  { %3348 = vmatmul.mubr.msk.f32.vlgmr.msra.gmra.mrb[16].mxu1 %vm40_vm3, %v3768_v58  ;;  %v1327_v59 = vsel %vm1326_vm10, %v1321_v57, %v1323_v54 }
  0xb2   :  { %3352 = vmatprep.mubr.msk.f32.mxu1 %vm3464_vm0, %v3463_v2 }
  0xb4   :  { %v1528_v60 = vpop.permute.xlu0 %1527  ;;  %3207 = vmatmul.mubr.msk.f32.vlgmr.msra.gmra.mrb[0].mxu0 %vm40_vm3, %v3753_v52  ;;  %v1530_v61 = vpop.permute.xlu1 %1529 }
  0xb5   :  { %3211 = vmatpush1.msk.msra.mxu0 %vm43_vm1, %v1327_v59  ;;  %v1532_v62 = vsel %vm37_vm2, %v1528_v60, %v1530_v61  ;;  %3351 = vmatpush3.msk.msra.mxu1 %vm43_vm1, %v1530_v61 }
  0xb6   :  { %3353 = vmatmul.mubr.msk.f32.vlgmr.msra.gmra.mrb[18].mxu1 %vm40_vm3, %v3647_v14  ;;  %3355 = vmatprep.subr.mxu1 %v3463_v2 }
  0xb7   :  { %3215 = vmatprep.subr.msk.mxu0 %vm43_vm1, %v1532_v62  ;;  %3356 = vmatpush3.msk.msra.mxu1 %vm43_vm1, %v3592_v8 }
  0xb8   :  { %v1526_v63 = vpop.permute.xlu0 %1525  ;;  %v1830_v0 = vpop.permute.xlu1 %1829  ;;  %3357 = vmatprep.mubr.msk.f32.mxu1 %vm3464_vm0, %v3463_v2  ;;  %1401 = vmatprep.mubr.f32.mxu0 %v3463_v2 }
  0xb9   :  { %3360 = vmatprep.subr.mxu1 %v3463_v2  ;;  %v1531_v1 = vsel %vm37_vm2, %v1526_v63, %v1528_v60  ;;  %v1492_v60 = vlaneseq }
  0xba   :  { %3358 = vmatmul.mubr.msk.f32.vlgmr.msra.gmra.mrb[20].mxu1 %vm40_vm3, %v3528_v4 }
  0xbb   :  { %3362 = vmatprep.mubr.msk.f32.mxu1 %vm3464_vm0, %v3463_v2  ;;  %v1493_v63 = vshrl.u32 %v1492_v60, 7 }
  0xbc   :  { %v1832_v3 = vpop.permute.xlu0 %1831  ;;  %3212 = vmatmul.mubr.msk.f32.vlgmr.msra.gmra.mrb[0].mxu0 %vm40_vm3, %v3768_v58  ;;  %v1828_v5 = vpop.permute.xlu1 %1827 }
  0xbd   :  { %3216 = vmatpush1.msk.msra.mxu0 %vm43_vm1, %v1531_v1  ;;  %3361 = vmatpush3.msk.msra.mxu1 %vm43_vm1, %v1832_v3  ;;  %v1834_v6 = vsel %vm348_vm4, %v1830_v0, %v1832_v3  ;;  %v1833_v12 = vsel %vm348_vm4, %v1828_v5, %v1830_v0  ;;  %v1494_v5 = vsub.s32 0, %v1493_v63 }
  0xbe   :  { %3363 = vmatmul.mubr.msk.f32.vlgmr.msra.gmra.mrb[22].mxu1 %vm40_vm3, %v3672_v21  ;;  %1603 = vmatprep.mubr.f32.mxu0 %v3463_v2 }
  0xbf   :  { %3220 = vmatprep.subr.msk.mxu0 %vm43_vm1, %v3590_v7  ;;  %3365 = vmatprep.subr.mxu1 %v3463_v2 }
  0xc0   :  { %v1988_v8 = vpop.permute.xlu0 %1987  ;;  %3217 = vmatmul.mubr.msk.f32.vlgmr.msra.gmra.mrb[2].mxu0 %vm40_vm3, %v3647_v14  ;;  %v1990_v9 = vpop.permute.xlu1 %1989  ;;  %3367 = vmatprep.mubr.msk.f32.mxu1 %vm3464_vm0, %v3463_v2 }
  0xc1   :  { %3221 = vmatpush1.msk.msra.mxu0 %vm43_vm1, %v3601_v10  ;;  %3366 = vmatpush3.msk.msra.mxu1 %vm43_vm1, %v1990_v9  ;;  %v1992_v10 = vsel %vm511_vm5, %v1988_v8, %v1990_v9 }
  0xc2   :  { %3368 = vmatmul.mubr.msk.f32.vlgmr.msra.gmra.mrb[24].mxu1 %vm40_vm3, %v3693_v28  ;;  %3225 = vmatprep.subr.msk.mxu0 %vm43_vm1, %v1834_v6 }
  0xc3   :  { %1750 = vmatprep.mubr.f32.mxu0 %v3463_v2  ;;  %3370 = vmatprep.subr.mxu1 %v3463_v2 }
  0xc4   :  { %v1986_v7 = vpop.permute.xlu0 %1985  ;;  %v2146_v11 = vpop.permute.xlu1 %2145  ;;  %3372 = vmatprep.mubr.msk.f32.mxu1 %vm3464_vm0, %v3463_v2 }
  0xc8   :  { %v2148_v13 = vpop.permute.xlu0 %2147  ;;  %3222 = vmatmul.mubr.msk.f32.vlgmr.msra.gmra.mrb[2].mxu0 %vm40_vm3, %v3528_v4  ;;  %v2144_v14 = vpop.permute.xlu1 %2143  ;;  %v1991_v4 = vsel %vm511_vm5, %v1986_v7, %v1988_v8  ;;  %v1502_v8 = vsub.s32 2, %v1493_v63  ;;  %v3169_v7 = vld [vmem:[%s3934_s0 + $0x18] ss:$8 sm:$0x7] }
  0xc9   :  { %3226 = vmatpush1.msk.msra.mxu0 %vm43_vm1, %v1833_v12  ;;  %3371 = vmatpush3.msk.msra.mxu1 %vm43_vm1, %v2148_v13  ;;  %v2150_v17 = vsel %vm674_vm6, %v2146_v11, %v2148_v13  ;;  %v2149_v23 = vsel %vm674_vm6, %v2144_v14, %v2146_v11  ;;  %v1498_v11 = vsub.s32 1, %v1493_v63  ;;  %v3070_v63 = vld [vmem:[%s3936_s1 + $0x8] sm:$0xff] }
  0xca   :  { %3373 = vmatmul.mubr.msk.f32.vlgmr.msra.gmra.mrb[26].mxu1 %vm40_vm3, %v3708_v34  ;;  %3375 = vmatprep.subr.mxu1 %v3463_v2 }
  0xcb   :  { %3230 = vmatprep.subr.msk.mxu0 %vm43_vm1, %v1992_v10  ;;  %3377 = vmatprep.mubr.msk.f32.mxu1 %vm3464_vm0, %v3463_v2 }
  0xcc   :  { %v2304_v15 = vpop.permute.xlu0 %2303  ;;  %v2306_v16 = vpop.permute.xlu1 %2305  ;;  %1905 = vmatprep.mubr.f32.mxu0 %v3463_v2 }
  0xcd   :  { %3376 = vmatpush3.msk.msra.mxu1 %vm43_vm1, %v2306_v16 }
  0xce   :  { %3378 = vmatmul.mubr.msk.f32.vlgmr.msra.gmra.mrb[28].mxu1 %vm40_vm3, %v3723_v40  ;;  %3380 = vmatprep.subr.mxu1 %v3463_v2 }
  0xcf   :  { %3382 = vmatprep.mubr.msk.f32.mxu1 %vm3464_vm0, %v3463_v2 }
  0xd0   :  { %v2302_v18 = vpop.permute.xlu0 %2301  ;;  %3227 = vmatmul.mubr.msk.f32.vlgmr.msra.gmra.mrb[2].mxu0 %vm40_vm3, %v3672_v21  ;;  %v2462_v19 = vpop.permute.xlu1 %2461  ;;  %v2308_v21 = vsel %vm837_vm7, %v2304_v15, %v2306_v16 }
  0xd1   :  { %3231 = vmatpush1.msk.msra.mxu0 %vm43_vm1, %v1991_v4  ;;  %2063 = vmatprep.mubr.f32.mxu0 %v3463_v2  ;;  %v2307_v27 = vsel %vm837_vm7, %v2302_v18, %v2304_v15  ;;  %v1495_v15 = vrot.slane %v3169_v7, %v1494_v5 }
  0xd2   :  { %3235 = vmatprep.subr.msk.mxu0 %vm43_vm1, %v2150_v17  ;;  %v1503_v17 = vrot.slane %v3169_v7, %v1502_v8  ;;  %v17_v8 = vld [vmem:[%s3935_s2 + $0x18] sm:$0xff] }
  0xd4   :  { %v2464_v20 = vpop.permute.xlu0 %2463  ;;  %v2460_v22 = vpop.permute.xlu1 %2459 }
  0xd5   :  { %3381 = vmatpush3.msk.msra.mxu1 %vm43_vm1, %v2464_v20  ;;  %v2465_v30 = vsel %vm1000_vm8, %v2460_v22, %v2462_v19 }
  0xd6   :  { %3383 = vmatmul.mubr.msk.f32.vlgmr.msra.gmra.mrb[30].mxu1 %vm40_vm3, %v3738_v46  ;;  %3385 = vmatprep.subr.mxu1 %v3463_v2 }
  0xd7   :  { %3387 = vmatprep.mubr.msk.f32.mxu1 %vm3464_vm0, %v3463_v2 }
  0xd8   :  { %v2620_v24 = vpop.permute.xlu0 %2619  ;;  %3232 = vmatmul.mubr.msk.f32.vlgmr.msra.gmra.mrb[2].mxu0 %vm40_vm3, %v3693_v28  ;;  %v2622_v25 = vpop.permute.xlu1 %2621  ;;  %v2466_v28 = vsel %vm1000_vm8, %v2462_v19, %v2464_v20  ;;  %v1499_v19 = vrot.slane %v3169_v7, %v1498_v11  ;;  %v3481_v7 = vmov 0.0|0.0  }
  0xd9   :  { %3236 = vmatpush1.msk.msra.mxu0 %vm43_vm1, %v2149_v23  ;;  %3386 = vmatpush3.msk.msra.mxu1 %vm43_vm1, %v2622_v25  ;;  %v2624_v31 = vsel %vm1163_vm9, %v2620_v24, %v2622_v25 }
  0xda   :  { %3388 = vmatmul.mubr.msk.f32.vlgmr.msra.gmra.mrb[32].mxu1 %vm40_vm3, %v3753_v52  ;;  %3240 = vmatprep.subr.msk.mxu0 %vm43_vm1, %v2308_v21 }
  0xdb   :  { %2221 = vmatprep.mubr.f32.mxu0 %v3463_v2  ;;  %3390 = vmatprep.subr.mxu1 %v3463_v2 }
  0xdc   :  { %v2618_v26 = vpop.permute.xlu0 %2617  ;;  %3392 = vmatprep.mubr.msk.f32.mxu1 %vm3464_vm0, %v3463_v2  ;;  %v2778_v32 = vpop.permute.xlu1 %2777 }
  0xdd   :  { %v2623_v33 = vsel %vm1163_vm9, %v2618_v26, %v2620_v24 }
  0xe0   :  { %v2780_v29 = vpop.permute.xlu0 %2779  ;;  %3237 = vmatmul.mubr.msk.f32.vlgmr.msra.gmra.mrb[2].mxu0 %vm40_vm3, %v3708_v34  ;;  %v2776_v35 = vpop.permute.xlu1 %2775 }
  0xe1   :  { %3241 = vmatpush1.msk.msra.mxu0 %vm43_vm1, %v2307_v27  ;;  %3391 = vmatpush3.msk.msra.mxu1 %vm43_vm1, %v2780_v29  ;;  %v2782_v34 = vsel %vm1326_vm10, %v2778_v32, %v2780_v29  ;;  %v2781_v36 = vsel %vm1326_vm10, %v2776_v35, %v2778_v32 }
  0xe2   :  { %3393 = vmatmul.mubr.msk.f32.vlgmr.msra.gmra.mrb[34].mxu1 %vm40_vm3, %v3768_v58  ;;  %3245 = vmatprep.subr.msk.mxu0 %vm43_vm1, %v2466_v28 }
  0xe3   :  { %2379 = vmatprep.mubr.f32.mxu0 %v3463_v2  ;;  %3404 = vmatprep.mubr.msk.f32.mxu1 %vm3464_vm0, %v3463_v2 }
  0xe4   :  { %3407 = vmatprep.subr.bf16.mxu1 %v3481_v7 }
  0xe8   :  { %3242 = vmatmul.mubr.msk.f32.vlgmr.msra.gmra.mrb[2].mxu0 %vm40_vm3, %v3723_v40 }
  0xe9   :  { %3246 = vmatpush1.msk.msra.mxu0 %vm43_vm1, %v2465_v30  ;;  %2537 = vmatprep.mubr.f32.mxu0 %v3463_v2 }
  0xea   :  { %3250 = vmatprep.subr.msk.mxu0 %vm43_vm1, %v2624_v31 }
  0xf0   :  { %3247 = vmatmul.mubr.msk.f32.vlgmr.msra.gmra.mrb[2].mxu0 %vm40_vm3, %v3738_v46 }
  0xf1   :  { %3251 = vmatpush1.msk.msra.mxu0 %vm43_vm1, %v2623_v33  ;;  %2695 = vmatprep.mubr.f32.mxu0 %v3463_v2  ;;  %v1483_v0 = vpop.permute.xlu0 %1482 }
  0xf2   :  { %3255 = vmatprep.subr.msk.mxu0 %vm43_vm1, %v2782_v34 }
  0xf8   :  { %3252 = vmatmul.mubr.msk.f32.vlgmr.msra.gmra.mrb[2].mxu0 %vm40_vm3, %v3753_v52 }
  0xf9   :  { %3256 = vmatpush1.msk.msra.mxu0 %vm43_vm1, %v2781_v36  ;;  %2853 = vmatprep.mubr.f32.mxu0 %v3463_v2 }
  0xfa   :  { %3395 = vmatprep.subr.mxu0 %v3463_v2 }
 0x100   :  { %3257 = vmatmul.mubr.msk.f32.vlgmr.msra.gmra.mrb[2].mxu0 %vm40_vm3, %v3768_v58 }
 0x101   :  { %3397 = vmatprep.mubr.msk.f32.mxu0 %vm3464_vm0, %v3463_v2  ;;  %vm3163_vm0 = vcmask 517120  }
 0x14d   :  { %v187_v37 = vpop.f32.mrb[0].mxu1 }
 0x14e   :  { %v3309_v38 = vpop.f32.mrb[1].mxu1 }
 0x152   :  { %v336_v39 = vpop.f32.mrb[2].mxu1 }
 0x153   :  { %v337_v40 = vadd.f32 %v336_v39, %v187_v37  ;;  %v3314_v41 = vpop.f32.mrb[3].mxu1 }
 0x156   :  { %v496_v42 = vpop.f32.mrb[4].mxu1 }
 0x157   :  { %v502_v43 = vadd.f32 %v496_v42, %v337_v40  ;;  %v3319_v44 = vpop.f32.mrb[5].mxu1 }
 0x15c   :  { %v659_v45 = vpop.f32.mrb[6].mxu1 }
 0x15d   :  { %v665_v46 = vadd.f32 %v659_v45, %v502_v43  ;;  %v3324_v47 = vpop.f32.mrb[7].mxu1 }
 0x164   :  { %v822_v48 = vpop.f32.mrb[8].mxu1 }
 0x165   :  { %v828_v49 = vadd.f32 %v822_v48, %v665_v46  ;;  %v3329_v50 = vpop.f32.mrb[9].mxu1 }
 0x16c   :  { %v985_v51 = vpop.f32.mrb[10].mxu1 }
 0x16d   :  { %v991_v52 = vadd.f32 %v985_v51, %v828_v49  ;;  %v3334_v53 = vpop.f32.mrb[11].mxu1 }
 0x174   :  { %v1148_v54 = vpop.f32.mrb[12].mxu1 }
 0x175   :  { %v1154_v55 = vadd.f32 %v1148_v54, %v991_v52  ;;  %v3339_v2 = vpop.f32.mrb[13].mxu1 }
 0x17c   :  { %v1311_v56 = vpop.f32.mrb[14].mxu1 }
 0x17d   :  { %v1317_v57 = vadd.f32 %v1311_v56, %v1154_v55  ;;  %v3344_v58 = vpop.f32.mrb[15].mxu1 }
 0x184   :  { %v1474_v59 = vpop.f32.mrb[16].mxu1 }
 0x185   :  { %v1480_v61 = vadd.f32 %v1474_v59, %v1317_v57  ;;  %v3349_v62 = vpop.f32.mrb[17].mxu1 }
 0x186   :  { %v3059_v62 = vld [vmem:[%s3936_s1] sm:$0xff] }
 0x187   :  { %v1487_v6 = vadd.f32 %v1483_v0, %v1480_v61 }
 0x189   :  { %v1676_v1 = vpop.f32.mrb[18].mxu1  ;;  %v1490_v4 = vmax.f32 %v1487_v6, 0.0  ;;  %v16_v6 = vld [vmem:[%s3935_s2 + $0x10] sm:$0xff] }
 0x18a   :  { %v3354_v3 = vpop.f32.mrb[19].mxu1  ;;  %v3408_v11 = vpack.c.bf16 %v17_v8, %v16_v6 }
 0x18b   :  { %v1509_v26 = vmul.f32 %v1503_v17, %v1490_v4 }
 0x18c   :  { %3409 = vmatpush3.bf16.msra.mxu1 %v3408_v11 }
 0x18d   :  { %v1823_v9 = vpop.f32.mrb[20].mxu1  ;;  %v1512_v32 = vsel %vm1511_vm11, %v1509_v26, 0.0  ;;  %v3262_v26 = vld [vmem:[%s3935_s2 + $0x21] ss:$0 sm:$0xff] }
 0x18e   :  { %v1824_v12 = vadd.f32 %v1823_v9, %v1676_v1  ;;  %v3359_v10 = vpop.f32.mrb[21].mxu1  ;;  %v3071_v1 = vsel %vm3060_vm12, %v3070_v63, 0.0  ;;  %v15_v9 = vld [vmem:[%s3935_s2 + $0x8] sm:$0xff] }
 0x18f   :  { %v1403_v13 = vpop.f32.mrb[0].mxu0  ;;  %v3072_v5 = vrot.slane %v3071_v1, 4  ;;  %3396 = vmatpush3.msra.mxu0 %v15_v9 }
 0x190   :  { %v1485_v14 = vadd.f32 %v1483_v0, %v1403_v13  ;;  %v1405_v16 = vpop.f32.mrb[1].mxu0 }
 0x191   :  { %v1486_v18 = vadd.f32 %v1483_v0, %v1405_v16  ;;  %v1978_v20 = vpop.f32.mrb[22].mxu1  ;;  %v3073_v10 = vadd.f32 %v3072_v5, %v3071_v1 }
 0x192   :  { %v1488_v22 = vmax.f32 %v1485_v14, 0.0  ;;  %v1984_v23 = vadd.f32 %v1978_v20, %v1824_v12  ;;  %v3364_v21 = vpop.f32.mrb[23].mxu1 }
 0x193   :  { %v1489_v24 = vmax.f32 %v1486_v18, 0.0  ;;  %v3074_v14 = vrot.slane %v3073_v10, 2 }
 0x194   :  { %v1507_v25 = vmul.f32 %v1495_v15, %v1488_v22 }
 0x195   :  { %v1508_v27 = vmul.f32 %v1499_v19, %v1489_v24  ;;  %v2136_v28 = vpop.f32.mrb[24].mxu1  ;;  %v3075_v16 = vadd.f32 %v3074_v14, %v3073_v10 }
 0x196   :  { %v2142_v29 = vadd.f32 %v2136_v28, %v1984_v23  ;;  %v3369_v30 = vpop.f32.mrb[25].mxu1 }
 0x197   :  { %v1510_v31 = vadd.f32 %v1508_v27, %v1507_v25 }
 0x199   :  { %v1513_v33 = vadd.f32 %v1512_v32, %v1510_v31  ;;  %v3260_v31 = vld [vmem:[%s3935_s2 + $0x20] ss:$0 sm:$0xff] }
 0x19b   :  { %1514 = vadd.xlane.f32.xlu1 %v1513_v33 }
 0x19d   :  { %v2294_v34 = vpop.f32.mrb[26].mxu1 }
 0x19e   :  { %v2300_v35 = vadd.f32 %v2294_v34, %v2142_v29  ;;  %v3374_v36 = vpop.f32.mrb[27].mxu1 }
 0x1a1   :  { %v2452_v37 = vpop.f32.mrb[28].mxu1 }
 0x1a2   :  { %v2458_v38 = vadd.f32 %v2452_v37, %v2300_v35  ;;  %v3379_v39 = vpop.f32.mrb[29].mxu1 }
 0x1a9   :  { %v2610_v40 = vpop.f32.mrb[30].mxu1 }
 0x1aa   :  { %v2616_v41 = vadd.f32 %v2610_v40, %v2458_v38  ;;  %v3384_v42 = vpop.f32.mrb[31].mxu1 }
 0x1ad   :  { %v2768_v43 = vpop.f32.mrb[32].mxu1 }
 0x1ae   :  { %v2774_v44 = vadd.f32 %v2768_v43, %v2616_v41  ;;  %v3389_v45 = vpop.f32.mrb[33].mxu1 }
 0x1b5   :  { %v2926_v46 = vpop.f32.mrb[34].mxu1 }
 0x1b6   :  { %v2932_v47 = vadd.f32 %v2926_v46, %v2774_v44  ;;  %v3394_v48 = vpop.f32.mrb[35].mxu1 }
 0x1b8   :  { %v2935_v49 = vadd.f32 %v2932_v47, %v1483_v0 }
 0x1ba   :  { %v2938_v50 = vmax.f32 %v2935_v49, 0.0 }
 0x1bc   :  { %v2941_v51 = vmul.f32 %v2938_v50, %v1503_v17  ;;  %v3076_v17 = vrot.slane %v3075_v16, 1 }
 0x1be   :  { %v2943_v60 = vsel %vm1511_vm11, %v2941_v51, 0.0 }
 0x1d3   :  { %v2855_v52 = vpop.f32.mrb[2].mxu0 }
 0x1d4   :  { %v2933_v53 = vadd.f32 %v2855_v52, %v1483_v0  ;;  %v2857_v54 = vpop.f32.mrb[3].mxu0 }
 0x1d5   :  { %v2934_v55 = vadd.f32 %v2857_v54, %v1483_v0  ;;  %v3061_v0 = vsel %vm3060_vm12, %v3059_v62, 0.0 }
 0x1d6   :  { %v2936_v2 = vmax.f32 %v2933_v53, 0.0  ;;  %v3062_v3 = vrot.slane %v3061_v0, 4 }
 0x1d7   :  { %v2937_v56 = vmax.f32 %v2934_v55, 0.0 }
 0x1d8   :  { %v2939_v57 = vmul.f32 %v2936_v2, %v1495_v15  ;;  %v3063_v12 = vadd.f32 %v3062_v3, %v3061_v0 }
 0x1d9   :  { %v2940_v58 = vmul.f32 %v2937_v56, %v1499_v19  ;;  %v3077_v19 = vadd.f32 %v3076_v17, %v3075_v16 }
 0x1da   :  { %v3064_v13 = vrot.slane %v3063_v12, 2 }
 0x1db   :  { %v2942_v59 = vadd.f32 %v2940_v58, %v2939_v57  ;;  %v3078_v22 = vmul.f32 0.125, %v3077_v19 }
 0x1dc   :  { %v3065_v15 = vadd.f32 %v3064_v13, %v3063_v12 }
 0x1dd   :  { %v2944_v61 = vadd.f32 %v2943_v60, %v2942_v59 }
 0x1de   :  { %v3066_v4 = vrot.slane %v3065_v15, 1 }
 0x1df   :  { %2945 = vadd.xlane.f32.xlu0 %v2944_v61 }
 0x1e0   :  { %v3067_v18 = vadd.f32 %v3066_v4, %v3065_v15 }
 0x1e2   :  { %v3069_v20 = vmul.f32 0.125, %v3067_v18 }
 0x1e4   :  { %v3080_v23 = vsel %vm3079_vm13, %v3069_v20, %v3078_v22 }
 0x1e5   :  { %3405 = vmatmul.mubr.msk.f32.vlgmr.msra.gmra.mrb[36].mxu1 %vm3060_vm12, %v3080_v23 }
 0x228   :  { %v1515_v21 = vpop.xlane.xlu1 %1514 }
 0x26c   :  { %v2946_v24 = vpop.xlane.xlu0 %2945 }
 0x26d   :  { %v2948_v25 = vsel %vm2947_vm14, %v1515_v21, %v2946_v24 }
 0x26e   :  { %2953 = vxpose.xlu1.b32.start.end [1/1] (short) (narrow) %v2948_v25, 8 }
 0x2b8   :  { %v3154_v27 = vpop.f32.mrb[36].mxu1 }
 0x2b9   :  { %v3155_v28 = vadd.f32 %v3262_v26, %v3154_v27  ;;  %v3406_v29 = vpop.f32.mrb[37].mxu1 }
 0x2bb   :  { %3159 = vrot.lane.b32.xlu0 %v3155_v28, %s3482_s26 }
 0x2ee   :  { %v2969_v30 = vpop.trf.xlu1 }
 0x2ef   :  { %3398 = vmatmul.mubr.msk.f32.vlgmr.msra.gmra.mrb[4].mxu0 %vm2985_vm15, %v2969_v30 }
 0x32d   :  { %v3160_v33 = vpop.permute.xlu0 %3159 }
 0x3c2   :  { %v3055_v32 = vpop.f32.mrb[4].mxu0 }
 0x3c3   :  { %v3056_v34 = vadd.f32 %v3260_v31, %v3055_v32  ;;  %v3399_v35 = vpop.f32.mrb[5].mxu0 }
 0x3c5   :  { %v3162_v36 = vsel %vm1511_vm11, %v3056_v34, %v3160_v33 }
 0x3c6   :  { %3164 = vst.msk [vmem:[%s3937_s3] sm:$0x3] %vm3163_vm0, %v3162_v36 }

</bundles_post_ra>
